<compile_context>
chip_gen: v7x
topology: tpu7x:2x2x1
jax: 0.10.0
libtpu: 0.0.40
codegen_flags: <defaults>
</compile_context>

<pallas_src>
import jax
import jax.numpy as jnp
from jax.experimental import pallas as pl
from jax.experimental.pallas import tpu as pltpu

MIB = 1024 * 1024


def find_multiple(n: int, k: int) -> int:
    if n % k == 0:
        return n
    return n + k - n % k


# --------------------------------------------------------------------------- kernels
def _ffn_kernel_multi(x_ref, w1_ref, w3_ref, w2_ref, o_ref, acc_ref):
    """grid = (M tiles, H tiles); H is the reduction axis of the second matmul."""
    h = pl.program_id(1)

    @pl.when(h == 0)
    def _():
        acc_ref[...] = jnp.zeros_like(acc_ref)

    x = x_ref[...]
    h1 = jnp.dot(x, w1_ref[...], preferred_element_type=jnp.float32)
    h3 = jnp.dot(x, w3_ref[...], preferred_element_type=jnp.float32)
    # SiLU in f32 (sigmoid goes to the EUP); elementwise in H so per-H-tile application is exact.
    g = (h1 * jax.nn.sigmoid(h1)) * h3
    # Cast the gate to the weight dtype so bf16 weights use the fast MXU path;
    # accumulation stays f32 (deliberate precision choice).
    acc_ref[...] += jnp.dot(g.astype(w2_ref.dtype), w2_ref[...],
                            preferred_element_type=jnp.float32)

    @pl.when(h == pl.num_programs(1) - 1)
    def _():
        o_ref[...] = acc_ref[...].astype(o_ref.dtype)


def _ffn_kernel_single(x_ref, w1_ref, w3_ref, w2_ref, o_ref):
    """Single-H-step specialization: no accumulator scratch, direct writeback."""
    x = x_ref[...]
    h1 = jnp.dot(x, w1_ref[...], preferred_element_type=jnp.float32)
    h3 = jnp.dot(x, w3_ref[...], preferred_element_type=jnp.float32)
    g = (h1 * jax.nn.sigmoid(h1)) * h3
    o_ref[...] = jnp.dot(g.astype(w2_ref.dtype), w2_ref[...],
                         preferred_element_type=jnp.float32).astype(o_ref.dtype)


# --------------------------------------------------------------------------- tiling helpers
def _sublane_align(dtype) -> int:
    # Rows per packed sublane group: f32 -> 8, bf16 -> 16, int8/fp8 -> 32.
    return 8 * max(1, 4 // jnp.dtype(dtype).itemsize)


def _vmem_physical_bytes() -> int:
    try:
        cap = getattr(pltpu.get_tpu_info(), "vmem_capacity_bytes", None)
        if cap:
            return int(cap)
    except Exception:
        pass
    return 64 * MIB  # conservative (v7x-sized) default if the query is unavailable


def _pick_th(H: int, th_target: int) -> int:
    """Largest multiple of 128 that divides H and is <= th_target (no weight padding)."""
    q = H // 128
    best = 128
    for d in range(1, max(1, th_target // 128) + 1):
        if q % d == 0:
            best = 128 * d
    return best


# --------------------------------------------------------------------------- wrapper
def feed_forward_pallas(x, w1_t, w3_t, w2_t, *, tm=None, th=None):
    """x: [B, S, D] -> [B, S, D].

    Weights are pre-transposed ONCE at init (PyTorch Linear stores (out, in)):
      w1_t, w3_t: [D, H]    w2_t: [H, D]
    They are not copied/padded per call (the hidden tile size divides H).
    """
    B, S, D = x.shape
    Dw, H = w1_t.shape
    assert Dw == D and w3_t.shape == (D, H) and w2_t.shape == (H, D)
    M = B * S
    x2d = x.reshape(M, D)

    xbytes = jnp.dtype(x.dtype).itemsize
    wbytes = jnp.dtype(w1_t.dtype).itemsize
    align = _sublane_align(x.dtype)

    # ---- chip-aware tile budget ------------------------------------------------
    phys = _vmem_physical_bytes()
    if phys <= 80 * MIB:                              # v7x-class: 64 MiB per TensorCore
        budget = min(phys - 12 * MIB, 52 * MIB)
        tm_target = 512                               # ~310 FLOPs/weight-byte saturates the MXU
        th_target = 512 if D <= 4096 else 256
    else:                                             # v5e / v6e: 128 MiB
        budget = min(phys - 16 * MIB, 100 * MIB)
        tm_target = 1024                              # weights re-stream once per M tile:
        th_target = 512                               #   bigger tm => more FLOPs per weight byte
    if tm is not None:
        tm_target = tm
    if th is not None:
        th_target = th

    # ---- hidden tile: divisor of H, multiple of 128 (pad fallback only if ragged)
    pad_h = 0
    if H % 128 == 0 and (th is None or (th % 128 == 0 and H % th == 0)):
        th_eff = th if th is not None else _pick_th(H, th_target)
        H_pad = H
    else:
        # Ragged H: pad the weights (per-call copy); avoided with multiple_of % 128 == 0.
        th_eff = find_multiple(min(th_target, find_multiple(H, 128)), 128)
        H_pad = find_multiple(H, th_eff)
        pad_h = H_pad - H
    n_h = H_pad // th_eff

    # ---- token tile: as large as the VMEM budget allows, balanced across M tiles
    w_tiles_bytes = 2 * (2 * D * th_eff * wbytes) + 2 * (th_eff * D * wbytes)  # db'd w1+w3, w2
    per_row_bytes = D * (2 * xbytes + 2 * xbytes) + (4 * D if n_h > 1 else 0)  # x, out, acc
    tm_cap = max(align, min(tm_target, int((budget - w_tiles_bytes) // per_row_bytes)))
    if M <= tm_cap:
        tm_eff = find_multiple(M, align)
    else:
        n_m = pl.cdiv(M, tm_cap)
        tm_eff = find_multiple(pl.cdiv(M, n_m), align)   # bounds zero-row padding waste
    M_pad = pl.cdiv(M, tm_eff) * tm_eff
    n_m = M_pad // tm_eff

    if M_pad != M:
        x2d = jnp.pad(x2d, ((0, M_pad - M), (0, 0)))     # zero rows contribute exactly zero
    if pad_h:
        w1_t = jnp.pad(w1_t, ((0, 0), (0, pad_h)))
        w3_t = jnp.pad(w3_t, ((0, 0), (0, pad_h)))
        w2_t = jnp.pad(w2_t, ((0, pad_h), (0, 0)))

    vmem_est = w_tiles_bytes + per_row_bytes * tm_eff
    vmem_limit = int(min(phys - 8 * MIB, max(32 * MIB, int(vmem_est * 1.25))))

    # Weights are fetched once per M tile -> reflect real HBM traffic for the scheduler.
    w_bytes_total = (w1_t.size + w3_t.size + w2_t.size) * wbytes
    cost = pl.CostEstimate(
        flops=6 * M_pad * D * H_pad,                      # three matmuls @ 2*M*D*H
        transcendentals=M_pad * H_pad,                    # sigmoid
        bytes_accessed=int(n_m * w_bytes_total + 2 * M_pad * D * xbytes))

    if n_h == 1:
        kernel = _ffn_kernel_single
        dims = ("parallel",)
        grid_spec = pltpu.PrefetchScalarGridSpec(
            num_scalar_prefetch=0,
            grid=(n_m,),
            in_specs=[
                pl.BlockSpec((tm_eff, D), lambda i: (i, 0)),      # x token tile
                pl.BlockSpec((D, th_eff), lambda i: (0, 0)),      # w1^T (whole H)
                pl.BlockSpec((D, th_eff), lambda i: (0, 0)),      # w3^T (whole H)
                pl.BlockSpec((th_eff, D), lambda i: (0, 0)),      # w2^T (whole H)
            ],
            out_specs=pl.BlockSpec((tm_eff, D), lambda i: (i, 0)),
        )
    else:
        kernel = _ffn_kernel_multi
        dims = ("parallel", "arbitrary")
        grid_spec = pltpu.PrefetchScalarGridSpec(
            num_scalar_prefetch=0,
            grid=(n_m, n_h),
            in_specs=[
                pl.BlockSpec((tm_eff, D), lambda i, h: (i, 0)),   # x token tile (resident over h)
                pl.BlockSpec((D, th_eff), lambda i, h: (0, h)),   # w1^T hidden tile
                pl.BlockSpec((D, th_eff), lambda i, h: (0, h)),   # w3^T hidden tile
                pl.BlockSpec((th_eff, D), lambda i, h: (h, 0)),   # w2^T hidden tile
            ],
            out_specs=pl.BlockSpec((tm_eff, D), lambda i, h: (i, 0)),
            scratch_shapes=[pltpu.VMEM((tm_eff, D), jnp.float32)],
        )

    out2d = pl.pallas_call(
        kernel,
        out_shape=jax.ShapeDtypeStruct((M_pad, D), x.dtype),
        grid_spec=grid_spec,
        compiler_params=pltpu.CompilerParams(
            dimension_semantics=dims,
            vmem_limit_bytes=vmem_limit),
        cost_estimate=cost,
    )(x2d, w1_t, w3_t, w2_t)

    return out2d[:M].reshape(B, S, D)


def feed_forward_ref(x, w1_t, w3_t, w2_t):
    h1 = x @ w1_t
    h3 = x @ w3_t
    return (jax.nn.silu(h1) * h3) @ w2_t


if __name__ == "__main__":
    # Small config consistent with ModelArgs semantics.
    dim = 128
    multiple_of = 128
    hidden_dim = 4 * dim
    hidden_dim = int(2 * hidden_dim / 3)
    hidden_dim = find_multiple(hidden_dim, multiple_of)   # -> 384

    batch, seq = 2, 8
    key = jax.random.PRNGKey(0)
    kx, k1, k3, k2 = jax.random.split(key, 4)

    init_std = 0.02
    x = jax.random.normal(kx, (batch, seq, dim), dtype=jnp.float32)
    # PyTorch Linear stores weight as (out, in); we keep the transposed (in, out) layout.
    w1_t = jax.random.normal(k1, (dim, hidden_dim), dtype=jnp.float32) * init_std
    w3_t = jax.random.normal(k3, (dim, hidden_dim), dtype=jnp.float32) * init_std
    w2_t = jax.random.normal(k2, (hidden_dim, dim), dtype=jnp.float32) * init_std

    # 1) f32, auto tiles (single H step -> specialized kernel without accumulator scratch).
    out = jax.block_until_ready(feed_forward_pallas(x, w1_t, w3_t, w2_t))
    ref = feed_forward_ref(x, w1_t, w3_t, w2_t)
    assert out.shape == (batch, seq, dim)
    assert jnp.allclose(out, ref, atol=1e-5, rtol=1e-5), "f32 mismatch vs reference"

    # 2) Forced multi-tile path: M and H tiling, M padding, accumulator init/writeback.
    x_big = jax.random.normal(kx, (2, 40, dim), dtype=jnp.float32)   # M=80 -> padded to 96
    out_big = jax.block_until_ready(
        feed_forward_pallas(x_big, w1_t, w3_t, w2_t, tm=32, th=128))
    ref_big = feed_forward_ref(x_big, w1_t, w3_t, w2_t)
    assert jnp.allclose(out_big, ref_big, atol=1e-5, rtol=1e-5), "tiled f32 mismatch"

    # 3) bf16 weights/activations (recommended production dtype on all generations),
    #    f32 accumulation inside the kernel.
    xb16, w1b, w3b, w2b = (a.astype(jnp.bfloat16) for a in (x, w1_t, w3_t, w2_t))
    out_bf16 = jax.block_until_ready(feed_forward_pallas(xb16, w1b, w3b, w2b))
    ref_bf16 = feed_forward_ref(*(a.astype(jnp.float32) for a in (xb16, w1b, w3b, w2b)))
    assert jnp.allclose(out_bf16.astype(jnp.float32), ref_bf16,
                        atol=1e-2, rtol=5e-2), "bf16 mismatch vs reference"

    print("KERNEL_OK")
</pallas_src>

<mosaic_0001>
module attributes {stable_mosaic.version = 11 : i64} {
  func.func @_ffn_kernel_single(%arg0: i32, %arg1: memref<16x128xf32, #tpu.memory_space<vmem>>, %arg2: memref<128x384xf32, #tpu.memory_space<vmem>>, %arg3: memref<128x384xf32, #tpu.memory_space<vmem>>, %arg4: memref<384x128xf32, #tpu.memory_space<vmem>>, %arg5: memref<16x128xf32, #tpu.memory_space<vmem>>) attributes {dimension_semantics = [#tpu.dimension_semantics<parallel>], iteration_bounds = array<i64: 1>, scalar_prefetch = 0 : i64, scratch_operands = 0 : i64, tpu.core_type = #tpu.core_type<tc>, window_params = [{transform_indices = @transform_0, window_bounds = array<i64: 16, 128>}, {pipeline_mode = #tpu.pipeline_mode<synchronous>, transform_indices = @transform_1, window_bounds = array<i64: 128, 384>}, {pipeline_mode = #tpu.pipeline_mode<synchronous>, transform_indices = @transform_2, window_bounds = array<i64: 128, 384>}, {pipeline_mode = #tpu.pipeline_mode<synchronous>, transform_indices = @transform_3, window_bounds = array<i64: 384, 128>}, {transform_indices = @transform_4, window_bounds = array<i64: 16, 128>}]} {
    %c0 = arith.constant 0 : index
    %c0_0 = arith.constant 0 : index
    %0 = vector.load %arg1[%c0, %c0_0] : memref<16x128xf32, #tpu.memory_space<vmem>>, vector<16x128xf32>
    %c0_1 = arith.constant 0 : index
    %c0_2 = arith.constant 0 : index
    %1 = vector.load %arg2[%c0_1, %c0_2] : memref<128x384xf32, #tpu.memory_space<vmem>>, vector<128x384xf32>
    %cst = arith.constant dense<0.000000e+00> : vector<16x384xf32>
    %2 = tpu.matmul %0, %1, %cst {dimension_numbers = #tpu.dot_dimension_numbers<[1], [0], [0], [1], [0, 0, 1, 1], [], []>} : vector<16x128xf32>, vector<128x384xf32>, vector<16x384xf32> -> vector<16x384xf32>
    %c0_3 = arith.constant 0 : index
    %c0_4 = arith.constant 0 : index
    %3 = vector.load %arg3[%c0_3, %c0_4] : memref<128x384xf32, #tpu.memory_space<vmem>>, vector<128x384xf32>
    %cst_5 = arith.constant dense<0.000000e+00> : vector<16x384xf32>
    %4 = tpu.matmul %0, %3, %cst_5 {dimension_numbers = #tpu.dot_dimension_numbers<[1], [0], [0], [1], [0, 0, 1, 1], [], []>} : vector<16x128xf32>, vector<128x384xf32>, vector<16x384xf32> -> vector<16x384xf32>
    %5 = arith.negf %2 : vector<16x384xf32>
    %6 = math.exp %5 : vector<16x384xf32>
    %cst_6 = arith.constant 1.000000e+00 : f32
    %7 = vector.broadcast %cst_6 : f32 to vector<16x384xf32>
    %8 = arith.addf %7, %6 : vector<16x384xf32>
    %9 = arith.divf %7, %8 : vector<16x384xf32>
    %10 = arith.mulf %2, %9 : vector<16x384xf32>
    %11 = arith.mulf %10, %4 : vector<16x384xf32>
    %c0_7 = arith.constant 0 : index
    %c0_8 = arith.constant 0 : index
    %12 = vector.load %arg4[%c0_7, %c0_8] : memref<384x128xf32, #tpu.memory_space<vmem>>, vector<384x128xf32>
    %cst_9 = arith.constant dense<0.000000e+00> : vector<16x128xf32>
    %13 = tpu.matmul %11, %12, %cst_9 {dimension_numbers = #tpu.dot_dimension_numbers<[1], [0], [0], [1], [0, 0, 1, 1], [], []>} : vector<16x384xf32>, vector<384x128xf32>, vector<16x128xf32> -> vector<16x128xf32>
    %c0_10 = arith.constant 0 : index
    %c0_11 = arith.constant 0 : index
    %14 = vector.load %arg5[%c0_10, %c0_11] : memref<16x128xf32, #tpu.memory_space<vmem>>, vector<16x128xf32>
    tpu.vector_store %arg5[%c0_10, %c0_11], %13 {strides = array<i32>} : memref<16x128xf32, #tpu.memory_space<vmem>>, vector<16x128xf32>,
    return
  }
  func.func @transform_0(%arg0: i32) -> (i32, i32) {
    %c0_i32 = arith.constant 0 : i32
    %c0_i32_0 = arith.constant 0 : i32
    return %arg0, %c0_i32 : i32, i32
  }
  func.func @transform_1(%arg0: i32) -> (i32, i32) {
    %c0_i32 = arith.constant 0 : i32
    %c0_i32_0 = arith.constant 0 : i32
    %c0_i32_1 = arith.constant 0 : i32
    return %c0_i32, %c0_i32_0 : i32, i32
  }
  func.func @transform_2(%arg0: i32) -> (i32, i32) {
    %c0_i32 = arith.constant 0 : i32
    %c0_i32_0 = arith.constant 0 : i32
    %c0_i32_1 = arith.constant 0 : i32
    return %c0_i32, %c0_i32_0 : i32, i32
  }
  func.func @transform_3(%arg0: i32) -> (i32, i32) {
    %c0_i32 = arith.constant 0 : i32
    %c0_i32_0 = arith.constant 0 : i32
    %c0_i32_1 = arith.constant 0 : i32
    return %c0_i32, %c0_i32_0 : i32, i32
  }
  func.func @transform_4(%arg0: i32) -> (i32, i32) {
    %c0_i32 = arith.constant 0 : i32
    %c0_i32_0 = arith.constant 0 : i32
    return %arg0, %c0_i32 : i32, i32
  }
}

</mosaic_0001>

<bundles_post_ra>
// kernel: tpu_custom_call.1
= control target key start
LH: loop header
LB: loop body
LE: loop exit
PB: predicated region body
PF: predicated region fallthrough
CT: control target
= control target key end

     0   :  { %9 = vsyncpa [#allocation3], 0  ;;  %s1422_s0 = inlined_call_operand.hbm [shape: f32[16,128], index: 0, kind: input, shape index: {}]   ;;  %s1423_s1 = inlined_call_operand.hbm [shape: f32[128,384], index: 1, kind: input, shape index: {}]   ;;  %s1424_s2 = inlined_call_operand.hbm [shape: f32[128,384], index: 2, kind: input, shape index: {}]   ;;  %s1425_s3 = inlined_call_operand.hbm [shape: f32[384,128], index: 3, kind: input, shape index: {}]   ;;  %s1426_s4 = inlined_call_operand.hbm [shape: f32[16,128], index: 4, kind: output, shape index: {}]  }
   0x1   :  { %10 = vsyncpa [#allocation6], 0 }
   0x2   :  { %11 = vsyncpa [#allocation9], 0 }
   0x3   :  { %12 = vsyncpa [#allocation4], 0  ;;  %s1289_s15 = smov [#allocation5]   ;;  %s1171_s19 = scalar_lea.hbm %s1423_s1, 6144 }
   0x4   :  { %s30_s16 = sshll.u32 %s1289_s15, 4  ;;  %p1172_p0 = scmp.ne.s32.totalorder %s1423_s1, %s1171_s19  ;;  %s31_s16 = int_to_ptr.vmem [resolvable:$true] %s30_s16 }
   0x5   :  { %p1175_p1 = scmp.lt.u32.totalorder %s1171_s19, %s1423_s1 }
   0x7   :  { %p1177_p2 = pnand %p1175_p1, %p1172_p0 }
   0x9   :  { %1180 = shalt.err (!%p1177_p2)
}
   0xa   :  { %s1181_s24 = scalar_lea.vmem %s31_s16, 6144  ;;  %p1186_p4 = scmp.lt.s32.totalorder %s31_s16, %s31_s16 }
   0xb   :  { %p1182_p3 = scmp.ne.s32.totalorder %s31_s16, %s1181_s24  ;;  %p1187_p5 = scmp.lt.s32.totalorder %s1181_s24, %s1181_s24 }
   0xd   :  { %p1188_p6 = por %p1187_p5, %p1186_p4 }
   0xf   :  { %p1189_p7 = pnand %p1188_p6, %p1182_p3 }
  0x11   :  { %1192 = shalt.err (!%p1189_p7)
}
  0x12   :  { %s1290_s25 = smov 384   ;;  %s1291_s26 = smov 24  }
  0x13   :  { %36 = dma.hbm_to_vmem [thread:$0]  %s1423_s1, 6144, %s31_s16, [#allocation6], %s1290_s25, %s1290_s25, %s1291_s26  }
  0x14   :  { %s1292_s29 = smov [#allocation2]   ;;  %s1193_s7 = scalar_lea.hbm %s1422_s0, 256 }
  0x15   :  { %s18_s30 = sshll.u32 %s1292_s29, 4  ;;  %p1194_p8 = scmp.ne.s32.totalorder %s1422_s0, %s1193_s7  ;;  %s19_s30 = int_to_ptr.vmem [resolvable:$true] %s18_s30 }
  0x16   :  { %p1197_p9 = scmp.lt.u32.totalorder %s1193_s7, %s1422_s0 }
  0x18   :  { %p1199_p10 = pnand %p1197_p9, %p1194_p8 }
  0x1a   :  { %1202 = shalt.err (!%p1199_p10)
}
  0x1b   :  { %s1203_s12 = scalar_lea.vmem %s19_s30, 256  ;;  %p1208_p12 = scmp.lt.s32.totalorder %s19_s30, %s19_s30 }
  0x1c   :  { %p1204_p11 = scmp.ne.s32.totalorder %s19_s30, %s1203_s12  ;;  %p1209_p13 = scmp.lt.s32.totalorder %s1203_s12, %s1203_s12 }
  0x1e   :  { %p1210_p0 = por %p1209_p13, %p1208_p12 }
  0x20   :  { %p1211_p1 = pnand %p1210_p0, %p1204_p11 }
  0x22   :  { %1214 = shalt.err (!%p1211_p1)
}
  0x23   :  { %s1293_s1 = smov 128   ;;  %s1294_s13 = smov 8  }
  0x24   :  { %24 = dma.hbm_to_vmem [thread:$0]  %s1422_s0, 256, %s19_s30, [#allocation3], %s1293_s1, %s1293_s1, %s1294_s13  }
  0x25   :  { %s1295_s16 = smov [#allocation7]   ;;  %s1296_s18 = smov [#allocation8]  }
  0x26   :  { %s42_s17 = sshll.u32 %s1295_s16, 4  ;;  %s54_s19 = sshll.u32 %s1296_s18, 4  ;;  %s43_s17 = int_to_ptr.vmem [resolvable:$true] %s42_s17  ;;  %s1354_s19 = int_to_ptr.vmem [resolvable:$true] %s54_s19 }
  0x27   :  { %s1215_s22 = scalar_lea.hbm %s1424_s2, 6144 }
  0x28   :  { %p1216_p2 = scmp.ne.s32.totalorder %s1424_s2, %s1215_s22  ;;  %p1219_p3 = scmp.lt.u32.totalorder %s1215_s22, %s1424_s2 }
  0x2a   :  { %p1221_p4 = pnand %p1219_p3, %p1216_p2 }
  0x2c   :  { %1224 = shalt.err (!%p1221_p4)
}
  0x2d   :  { %s1225_s0 = scalar_lea.vmem %s43_s17, 6144  ;;  %p1230_p6 = scmp.lt.s32.totalorder %s43_s17, %s43_s17 }
  0x2e   :  { %p1226_p5 = scmp.ne.s32.totalorder %s43_s17, %s1225_s0  ;;  %p1231_p7 = scmp.lt.s32.totalorder %s1225_s0, %s1225_s0 }
  0x30   :  { %p1232_p8 = por %p1231_p7, %p1230_p6 }
  0x32   :  { %p1233_p9 = pnand %p1232_p8, %p1226_p5 }
  0x34   :  { %1236 = shalt.err (!%p1233_p9)
}
  0x35   :  { %48 = dma.hbm_to_vmem [thread:$0]  %s1424_s2, 6144, %s43_s17, [#allocation6], %s1290_s25, %s1290_s25, %s1291_s26  }
  0x36   :  { %s1237_s7 = scalar_lea.hbm %s1425_s3, 6144 }
  0x37   :  { %p1238_p10 = scmp.ne.s32.totalorder %s1425_s3, %s1237_s7  ;;  %p1241_p11 = scmp.lt.u32.totalorder %s1237_s7, %s1425_s3 }
  0x39   :  { %p1243_p12 = pnand %p1241_p11, %p1238_p10 }
  0x3b   :  { %1246 = shalt.err (!%p1243_p12)
}
  0x3c   :  { %s1247_s12 = scalar_lea.vmem %s1354_s19, 6144  ;;  %p1252_p0 = scmp.lt.s32.totalorder %s1354_s19, %s1354_s19 }
  0x3d   :  { %p1248_p13 = scmp.ne.s32.totalorder %s1354_s19, %s1247_s12  ;;  %p1253_p1 = scmp.lt.s32.totalorder %s1247_s12, %s1247_s12 }
  0x3f   :  { %p1254_p2 = por %p1253_p1, %p1252_p0 }
  0x41   :  { %p1255_p3 = pnand %p1254_p2, %p1248_p13 }
  0x43   :  { %1258 = shalt.err (!%p1255_p3)
}
  0x44   :  { %60 = dma.hbm_to_vmem [thread:$0]  %s1425_s3, 6144, %s1354_s19, [#allocation9], %s1293_s1, %s1293_s1, %s1294_s13  }
  0x45   :  { %1281 = dma.done.wait [#allocation3], 256  }
  0x46   :  { %1282 = vsyncadd [#allocation3], 4294967040 }
  0x47   :  { %1283 = dma.done.wait [#allocation6], 12288  }
  0x48   :  { %1284 = vsyncadd [#allocation6], 4294955008 }
  0x49   :  { %1285 = dma.done.wait [#allocation9], 6144  }
  0x4a   :  { %1286 = vsyncadd [#allocation9], 4294961152  ;;  %v1297_v0 = vmov 0.0   ;;  %v76_v1 = vld [vmem:[#allocation5 + $0x8] sm:$0xff]  ;;  %v79_v2 = vld [vmem:[#allocation5 + $0x20] sm:$0xff]  ;;  %s1298_s3 = smov [#allocation10]  }
  0x4b   :  { %187 = vmatprep.mubr.f32.mxu0 %v1297_v0  ;;  %v77_v3 = vld [vmem:[#allocation5 + $0x10] sm:$0xff]  ;;  %v945_v4 = vpack.c.bf16 %v79_v2, %v76_v1  ;;  %v80_v5 = vld [vmem:[#allocation5 + $0x28] sm:$0xff]  ;;  %v75_v6 = vld [vmem:[#allocation5] sm:$0xff]  ;;  %s728_s26 = sshll.u32 %s1298_s3, 4  ;;  %s729_s26 = int_to_ptr.vmem [resolvable:$true] %s728_s26 }
  0x4c   :  { %v78_v7 = vld [vmem:[#allocation5 + $0x18] sm:$0xff]  ;;  %v977_v8 = vpack.c.bf16 %v80_v5, %v77_v3  ;;  %v85_v11 = vld [vmem:[#allocation5 + $0x50] sm:$0xff]  ;;  %v83_v12 = vld [vmem:[#allocation5 + $0x40] sm:$0xff]  ;;  %s1259_s14 = scalar_lea.vmem %s729_s26, 256  ;;  %p1264_p5 = scmp.lt.s32.totalorder %s729_s26, %s729_s26 }
  0x4d   :  { %v947_v9 = vpack.c.bf16 %v78_v7, %v75_v6  ;;  %v82_v10 = vld [vmem:[#allocation5 + $0x38] sm:$0xff]  ;;  %946 = vmatprep.subr.bf16.mxu0 %v945_v4  ;;  %v81_v15 = vld [vmem:[#allocation5 + $0x30] sm:$0xff]  ;;  %v84_v16 = vld [vmem:[#allocation5 + $0x48] sm:$0xff]  ;;  %p1260_p4 = scmp.ne.s32.totalorder %s729_s26, %s1259_s14  ;;  %p1265_p6 = scmp.lt.s32.totalorder %s1259_s14, %s1259_s14 }
  0x4e   :  { %v949_v13 = vpack.c.bf16 %v85_v11, %v82_v10  ;;  %v86_v14 = vld [vmem:[#allocation5 + $0x58] sm:$0xff]  ;;  %978 = vmatprep.subr.bf16.mxu1 %v977_v8  ;;  %v951_v18 = vpack.c.bf16 %v84_v16, %v81_v15  ;;  %v88_v19 = vld [vmem:[#allocation5 + $0x68] sm:$0xff]  ;;  %v91_v20 = vld [vmem:[#allocation5 + $0x80] sm:$0xff] }
  0x4f   :  { %948 = vmatpush1.bf16.msra.mxu0 %v947_v9  ;;  %v981_v17 = vpack.c.bf16 %v86_v14, %v83_v12  ;;  %v89_v21 = vld [vmem:[#allocation5 + $0x70] sm:$0xff]  ;;  %980 = vmatpush3.bf16.msra.mxu1 %v977_v8  ;;  %v953_v22 = vpack.c.bf16 %v91_v20, %v88_v19  ;;  %v92_v23 = vld [vmem:[#allocation5 + $0x88] sm:$0xff]  ;;  %v87_v24 = vld [vmem:[#allocation5 + $0x60] sm:$0xff]  ;;  %p1266_p7 = por %p1265_p6, %p1264_p5 }
  0x50   :  { %950 = vmatprep.subr.bf16.mxu0 %v949_v13  ;;  %v90_v25 = vld [vmem:[#allocation5 + $0x78] sm:$0xff]  ;;  %v985_v26 = vpack.c.bf16 %v92_v23, %v89_v21  ;;  %v97_v28 = vld [vmem:[#allocation5 + $0xb0] sm:$0xff]  ;;  %v95_v29 = vld [vmem:[#allocation5 + $0xa0] sm:$0xff] }
  0x51   :  { %982 = vmatprep.subr.bf16.mxu1 %v981_v17  ;;  %v94_v27 = vld [vmem:[#allocation5 + $0x98] sm:$0xff]  ;;  %v955_v31 = vpack.c.bf16 %v90_v25, %v87_v24  ;;  %v93_v33 = vld [vmem:[#allocation5 + $0x90] sm:$0xff]  ;;  %v96_v34 = vld [vmem:[#allocation5 + $0xa8] sm:$0xff]  ;;  %p1267_p8 = pnand %p1266_p7, %p1260_p4 }
  0x52   :  { %v98_v30 = vld [vmem:[#allocation5 + $0xb8] sm:$0xff]  ;;  %v957_v32 = vpack.c.bf16 %v97_v28, %v94_v27  ;;  %v100_v36 = vld [vmem:[#allocation5 + $0xc8] sm:$0xff]  ;;  %v103_v37 = vld [vmem:[#allocation5 + $0xe0] sm:$0xff]  ;;  %v959_v40 = vpack.c.bf16 %v96_v34, %v93_v33 }
  0x53   :  { %952 = vmatpush1.bf16.msra.mxu0 %v951_v18  ;;  %984 = vmatpush3.bf16.msra.mxu1 %v981_v17  ;;  %v989_v35 = vpack.c.bf16 %v98_v30, %v95_v29  ;;  %v101_v38 = vld [vmem:[#allocation5 + $0xd0] sm:$0xff]  ;;  %v104_v39 = vld [vmem:[#allocation5 + $0xe8] sm:$0xff]  ;;  %v961_v41 = vpack.c.bf16 %v103_v37, %v100_v36  ;;  %v99_v42 = vld [vmem:[#allocation5 + $0xc0] sm:$0xff] }
  0x54   :  { %954 = vmatprep.subr.bf16.mxu0 %v953_v22  ;;  %986 = vmatprep.subr.bf16.mxu1 %v985_v26  ;;  %v102_v43 = vld [vmem:[#allocation5 + $0xd8] sm:$0xff]  ;;  %v993_v44 = vpack.c.bf16 %v104_v39, %v101_v38  ;;  %v109_v46 = vld [vmem:[#allocation5 + $0x110] sm:$0xff]  ;;  %v107_v47 = vld [vmem:[#allocation5 + $0x100] sm:$0xff] }
  0x55   :  { %v106_v45 = vld [vmem:[#allocation5 + $0xf8] sm:$0xff]  ;;  %v963_v49 = vpack.c.bf16 %v102_v43, %v99_v42  ;;  %v1392_v50 = vld [vmem:[#allocation2] sm:$0xff]  ;;  %v108_v53 = vld [vmem:[#allocation5 + $0x108] sm:$0xff] }
  0x56   :  { %v110_v48 = vld [vmem:[#allocation5 + $0x118] sm:$0xff]  ;;  %v965_v51 = vpack.c.bf16 %v109_v46, %v106_v45  ;;  %v105_v52 = vld [vmem:[#allocation5 + $0xf0] sm:$0xff]  ;;  %v112_v55 = vld [vmem:[#allocation5 + $0x128] sm:$0xff]  ;;  %872 = vmatprep.mubr.f32.mxu1 %v1392_v50 }
  0x57   :  { %956 = vmatpush1.bf16.msra.mxu0 %v955_v31  ;;  %988 = vmatpush3.bf16.msra.mxu1 %v985_v26  ;;  %v997_v54 = vpack.c.bf16 %v110_v48, %v107_v47  ;;  %v115_v56 = vld [vmem:[#allocation5 + $0x140] sm:$0xff]  ;;  %v113_v57 = vld [vmem:[#allocation5 + $0x130] sm:$0xff]  ;;  %v116_v58 = vld [vmem:[#allocation5 + $0x148] sm:$0xff]  ;;  %v967_v59 = vpack.c.bf16 %v108_v53, %v105_v52 }
  0x58   :  { %958 = vmatprep.subr.bf16.mxu0 %v957_v32  ;;  %990 = vmatprep.subr.bf16.mxu1 %v989_v35  ;;  %v969_v60 = vpack.c.bf16 %v115_v56, %v112_v55  ;;  %v111_v61 = vld [vmem:[#allocation5 + $0x120] sm:$0xff]  ;;  %v114_v62 = vld [vmem:[#allocation5 + $0x138] sm:$0xff]  ;;  %v1001_v63 = vpack.c.bf16 %v116_v58, %v113_v57  ;;  %v121_v2 = vld [vmem:[#allocation5 + $0x170] sm:$0xff] }
  0x59   :  { %v118_v1 = vld [vmem:[#allocation5 + $0x158] sm:$0xff]  ;;  %v119_v3 = vld [vmem:[#allocation5 + $0x160] sm:$0xff]  ;;  %v971_v5 = vpack.c.bf16 %v114_v62, %v111_v61  ;;  %v117_v7 = vld [vmem:[#allocation5 + $0x150] sm:$0xff] }
  0x5a   :  { %v122_v4 = vld [vmem:[#allocation5 + $0x178] sm:$0xff]  ;;  %v973_v6 = vpack.c.bf16 %v121_v2, %v118_v1  ;;  %v120_v8 = vld [vmem:[#allocation5 + $0x168] sm:$0xff]  ;;  %v279_v11 = vld [vmem:[#allocation7 + $0x20] sm:$0xff] }
  0x5b   :  { %960 = vmatpush1.bf16.msra.mxu0 %v959_v40  ;;  %992 = vmatpush3.bf16.msra.mxu1 %v989_v35  ;;  %v1005_v9 = vpack.c.bf16 %v122_v4, %v119_v3  ;;  %v276_v10 = vld [vmem:[#allocation7 + $0x8] sm:$0xff]  ;;  %v277_v12 = vld [vmem:[#allocation7 + $0x10] sm:$0xff]  ;;  %v975_v14 = vpack.c.bf16 %v120_v8, %v117_v7  ;;  %v275_v16 = vld [vmem:[#allocation7] sm:$0xff] }
  0x5c   :  { %962 = vmatprep.subr.bf16.mxu0 %v961_v41  ;;  %994 = vmatprep.subr.bf16.mxu1 %v993_v44  ;;  %v280_v13 = vld [vmem:[#allocation7 + $0x28] sm:$0xff]  ;;  %v1009_v15 = vpack.c.bf16 %v279_v11, %v276_v10  ;;  %v278_v17 = vld [vmem:[#allocation7 + $0x18] sm:$0xff]  ;;  %v285_v20 = vld [vmem:[#allocation7 + $0x50] sm:$0xff] }
  0x5d   :  { %v1041_v18 = vpack.c.bf16 %v280_v13, %v277_v12  ;;  %v282_v19 = vld [vmem:[#allocation7 + $0x38] sm:$0xff]  ;;  %v283_v21 = vld [vmem:[#allocation7 + $0x40] sm:$0xff]  ;;  %v1011_v23 = vpack.c.bf16 %v278_v17, %v275_v16  ;;  %v281_v25 = vld [vmem:[#allocation7 + $0x30] sm:$0xff] }
  0x5e   :  { %v286_v22 = vld [vmem:[#allocation7 + $0x58] sm:$0xff]  ;;  %v284_v26 = vld [vmem:[#allocation7 + $0x48] sm:$0xff]  ;;  %v1013_v27 = vpack.c.bf16 %v285_v20, %v282_v19  ;;  %v291_v30 = vld [vmem:[#allocation7 + $0x80] sm:$0xff] }
  0x5f   :  { %964 = vmatpush1.bf16.msra.mxu0 %v963_v49  ;;  %996 = vmatpush3.bf16.msra.mxu1 %v993_v44  ;;  %v1395_v24 = vld [vmem:[#allocation2 + $0x8] sm:$0xff]  ;;  %v1045_v28 = vpack.c.bf16 %v286_v22, %v283_v21  ;;  %v288_v29 = vld [vmem:[#allocation7 + $0x68] sm:$0xff]  ;;  %v289_v31 = vld [vmem:[#allocation7 + $0x70] sm:$0xff]  ;;  %v1015_v33 = vpack.c.bf16 %v284_v26, %v281_v25 }
  0x60   :  { %966 = vmatprep.subr.bf16.mxu0 %v965_v51  ;;  %998 = vmatprep.subr.bf16.mxu1 %v997_v54  ;;  %v292_v32 = vld [vmem:[#allocation7 + $0x88] sm:$0xff]  ;;  %v1017_v34 = vpack.c.bf16 %v291_v30, %v288_v29  ;;  %v287_v35 = vld [vmem:[#allocation7 + $0x60] sm:$0xff]  ;;  %v290_v36 = vld [vmem:[#allocation7 + $0x78] sm:$0xff] }
  0x61   :  { %v1049_v37 = vpack.c.bf16 %v292_v32, %v289_v31  ;;  %v294_v38 = vld [vmem:[#allocation7 + $0x98] sm:$0xff]  ;;  %v297_v39 = vld [vmem:[#allocation7 + $0xb0] sm:$0xff]  ;;  %v295_v40 = vld [vmem:[#allocation7 + $0xa0] sm:$0xff]  ;;  %v1019_v42 = vpack.c.bf16 %v290_v36, %v287_v35 }
  0x62   :  { %v298_v41 = vld [vmem:[#allocation7 + $0xb8] sm:$0xff]  ;;  %v1021_v43 = vpack.c.bf16 %v297_v39, %v294_v38  ;;  %v293_v44 = vld [vmem:[#allocation7 + $0x90] sm:$0xff]  ;;  %v296_v45 = vld [vmem:[#allocation7 + $0xa8] sm:$0xff] }
  0x63   :  { %968 = vmatpush1.bf16.msra.mxu0 %v967_v59  ;;  %1000 = vmatpush3.bf16.msra.mxu1 %v997_v54  ;;  %v1053_v46 = vpack.c.bf16 %v298_v41, %v295_v40  ;;  %v300_v47 = vld [vmem:[#allocation7 + $0xc8] sm:$0xff]  ;;  %v303_v48 = vld [vmem:[#allocation7 + $0xe0] sm:$0xff]  ;;  %v301_v49 = vld [vmem:[#allocation7 + $0xd0] sm:$0xff]  ;;  %v1023_v52 = vpack.c.bf16 %v296_v45, %v293_v44 }
  0x64   :  { %970 = vmatprep.subr.bf16.mxu0 %v969_v60  ;;  %1002 = vmatprep.subr.bf16.mxu1 %v1001_v63  ;;  %v304_v51 = vld [vmem:[#allocation7 + $0xe8] sm:$0xff]  ;;  %v1025_v53 = vpack.c.bf16 %v303_v48, %v300_v47  ;;  %v299_v54 = vld [vmem:[#allocation7 + $0xc0] sm:$0xff]  ;;  %v302_v55 = vld [vmem:[#allocation7 + $0xd8] sm:$0xff] }
  0x65   :  { %v1057_v56 = vpack.c.bf16 %v304_v51, %v301_v49  ;;  %v306_v57 = vld [vmem:[#allocation7 + $0xf8] sm:$0xff]  ;;  %v309_v58 = vld [vmem:[#allocation7 + $0x110] sm:$0xff]  ;;  %v307_v59 = vld [vmem:[#allocation7 + $0x100] sm:$0xff]  ;;  %v1027_v61 = vpack.c.bf16 %v302_v55, %v299_v54 }
  0x66   :  { %v310_v60 = vld [vmem:[#allocation7 + $0x118] sm:$0xff]  ;;  %v1029_v62 = vpack.c.bf16 %v309_v58, %v306_v57  ;;  %v308_v1 = vld [vmem:[#allocation7 + $0x108] sm:$0xff]  ;;  %v315_v4 = vld [vmem:[#allocation7 + $0x140] sm:$0xff] }
  0x67   :  { %972 = vmatpush1.bf16.msra.mxu0 %v971_v5  ;;  %1004 = vmatpush3.bf16.msra.mxu1 %v1001_v63  ;;  %v305_v63 = vld [vmem:[#allocation7 + $0xf0] sm:$0xff]  ;;  %v1061_v2 = vpack.c.bf16 %v310_v60, %v307_v59  ;;  %v312_v3 = vld [vmem:[#allocation7 + $0x128] sm:$0xff]  ;;  %v314_v10 = vld [vmem:[#allocation7 + $0x138] sm:$0xff] }
  0x68   :  { %974 = vmatprep.subr.bf16.mxu0 %v973_v6  ;;  %1006 = vmatprep.subr.bf16.mxu1 %v1005_v9  ;;  %v313_v5 = vld [vmem:[#allocation7 + $0x130] sm:$0xff]  ;;  %v316_v6 = vld [vmem:[#allocation7 + $0x148] sm:$0xff]  ;;  %v1031_v7 = vpack.c.bf16 %v308_v1, %v305_v63  ;;  %v1033_v8 = vpack.c.bf16 %v315_v4, %v312_v3  ;;  %v318_v12 = vld [vmem:[#allocation7 + $0x158] sm:$0xff] }
  0x69   :  { %v1065_v11 = vpack.c.bf16 %v316_v6, %v313_v5  ;;  %v321_v13 = vld [vmem:[#allocation7 + $0x170] sm:$0xff]  ;;  %v320_v19 = vld [vmem:[#allocation7 + $0x168] sm:$0xff]  ;;  %v539_v22 = vld [vmem:[#allocation8 + $0x80] sm:$0xff] }
  0x6a   :  { %v1037_v17 = vpack.c.bf16 %v321_v13, %v318_v12  ;;  %v555_v25 = vld [vmem:[#allocation8 + $0x100] sm:$0xff]  ;;  %v524_v29 = vld [vmem:[#allocation8 + $0x8] sm:$0xff]  ;;  %v541_v32 = vld [vmem:[#allocation8 + $0x90] sm:$0xff] }
  0x6b   :  { %976 = vmatpush1.bf16.msra.mxu0 %v975_v14  ;;  %1008 = vmatpush3.bf16.msra.mxu1 %v1005_v9  ;;  %v311_v9 = vld [vmem:[#allocation7 + $0x120] sm:$0xff]  ;;  %v525_v35 = vld [vmem:[#allocation8 + $0x10] sm:$0xff]  ;;  %v544_v39 = vld [vmem:[#allocation8 + $0xa8] sm:$0xff] }
  0x6c   :  { %1010 = vmatprep.subr.bf16.mxu0 %v1009_v15  ;;  %1042 = vmatprep.subr.bf16.mxu1 %v1041_v18  ;;  %v319_v14 = vld [vmem:[#allocation7 + $0x160] sm:$0xff]  ;;  %v322_v15 = vld [vmem:[#allocation7 + $0x178] sm:$0xff]  ;;  %v1035_v16 = vpack.c.bf16 %v314_v10, %v311_v9  ;;  %v528_v44 = vld [vmem:[#allocation8 + $0x28] sm:$0xff] }
  0x6d   :  { %v1069_v20 = vpack.c.bf16 %v322_v15, %v319_v14  ;;  %v543_v38 = vld [vmem:[#allocation8 + $0xa0] sm:$0xff]  ;;  %v545_v47 = vld [vmem:[#allocation8 + $0xb0] sm:$0xff]  ;;  %v546_v48 = vld [vmem:[#allocation8 + $0xb8] sm:$0xff] }
  0x6e   :  { %188 = vmatmul.mubr.f32.vlgmr.msra.gmra.mrb[0].mxu0 %v1392_v50  ;;  %873 = vmatmul.mubr.f32.vlgmr.msra.gmra.mrb[0].mxu1 %v1395_v24  ;;  %v559_v40 = vld [vmem:[#allocation8 + $0x120] sm:$0xff]  ;;  %v1081_v41 = vpack.c.bf16 %v544_v39, %v543_v38  ;;  %v561_v49 = vld [vmem:[#allocation8 + $0x130] sm:$0xff]  ;;  %v1085_v51 = vpack.c.bf16 %v546_v48, %v545_v47  ;;  %v530_v54 = vld [vmem:[#allocation8 + $0x38] sm:$0xff] }
  0x6f   :  { %1012 = vmatpush1.bf16.msra.mxu0 %v1011_v23  ;;  %1044 = vmatpush3.bf16.msra.mxu1 %v1041_v18  ;;  %v317_v18 = vld [vmem:[#allocation7 + $0x150] sm:$0xff]  ;;  %v540_v23 = vld [vmem:[#allocation8 + $0x88] sm:$0xff]  ;;  %v547_v57 = vld [vmem:[#allocation8 + $0xc0] sm:$0xff] }
  0x70   :  { %193 = vmatprep.mubr.f32.mxu0 %v1297_v0  ;;  %1014 = vmatprep.subr.bf16.mxu0 %v1013_v27  ;;  %v1039_v21 = vpack.c.bf16 %v320_v19, %v317_v18  ;;  %v1073_v26 = vpack.c.bf16 %v540_v23, %v539_v22  ;;  %v556_v27 = vld [vmem:[#allocation8 + $0x108] sm:$0xff]  ;;  %v563_v59 = vld [vmem:[#allocation8 + $0x140] sm:$0xff]  ;;  %v549_v3 = vld [vmem:[#allocation8 + $0xd0] sm:$0xff] }
  0x71   :  { %1046 = vmatprep.subr.bf16.mxu1 %v1045_v28  ;;  %907 = vmatprep.mubr.f32.mxu1 %v1392_v50  ;;  %v1105_v30 = vpack.c.bf16 %v556_v27, %v555_v25  ;;  %v548_v58 = vld [vmem:[#allocation8 + $0xc8] sm:$0xff]  ;;  %v550_v4 = vld [vmem:[#allocation8 + $0xd8] sm:$0xff]  ;;  %v565_v5 = vld [vmem:[#allocation8 + $0x150] sm:$0xff] }
  0x72   :  { %194 = vmatmul.mubr.f32.gmra.mrb[2].mxu0 %v1395_v24  ;;  %v1089_v60 = vpack.c.bf16 %v548_v58, %v547_v57  ;;  %v532_v63 = vld [vmem:[#allocation8 + $0x48] sm:$0xff]  ;;  %v1093_v6 = vpack.c.bf16 %v550_v4, %v549_v3  ;;  %v534_v9 = vld [vmem:[#allocation8 + $0x58] sm:$0xff]  ;;  %v551_v12 = vld [vmem:[#allocation8 + $0xe0] sm:$0xff] }
  0x73   :  { %1016 = vmatpush1.bf16.msra.mxu0 %v1015_v33  ;;  %387 = vmatprep.mubr.f32.mxu0 %v1297_v0  ;;  %v557_v33 = vld [vmem:[#allocation8 + $0x110] sm:$0xff]  ;;  %v552_v13 = vld [vmem:[#allocation8 + $0xe8] sm:$0xff]  ;;  %v567_v14 = vld [vmem:[#allocation8 + $0x160] sm:$0xff] }
  0x74   :  { %1048 = vmatpush3.bf16.msra.mxu1 %v1045_v28  ;;  %1018 = vmatprep.subr.bf16.mxu0 %v1017_v34  ;;  %v523_v28 = vld [vmem:[#allocation8] sm:$0xff]  ;;  %v1097_v15 = vpack.c.bf16 %v552_v13, %v551_v12  ;;  %v536_v18 = vld [vmem:[#allocation8 + $0x68] sm:$0xff]  ;;  %v554_v22 = vld [vmem:[#allocation8 + $0xf8] sm:$0xff] }
  0x75   :  { %1050 = vmatprep.subr.bf16.mxu1 %v1049_v37  ;;  %v1075_v31 = vpack.c.bf16 %v524_v29, %v523_v28  ;;  %v569_v23 = vld [vmem:[#allocation8 + $0x170] sm:$0xff]  ;;  %v538_v28 = vld [vmem:[#allocation8 + $0x78] sm:$0xff] }
  0x76   :  { %v537_v27 = vld [vmem:[#allocation8 + $0x70] sm:$0xff] }
  0x77   :  { %1020 = vmatpush1.bf16.msra.mxu0 %v1019_v42  ;;  %v560_v42 = vld [vmem:[#allocation8 + $0x128] sm:$0xff] }
  0x78   :  { %1052 = vmatpush3.bf16.msra.mxu1 %v1049_v37  ;;  %1022 = vmatprep.subr.bf16.mxu0 %v1021_v43  ;;  %v527_v43 = vld [vmem:[#allocation8 + $0x20] sm:$0xff]  ;;  %v1113_v45 = vpack.c.bf16 %v560_v42, %v559_v40 }
  0x79   :  { %1054 = vmatprep.subr.bf16.mxu1 %v1053_v46 }
  0x7b   :  { %1024 = vmatpush1.bf16.msra.mxu0 %v1023_v52  ;;  %v562_v52 = vld [vmem:[#allocation8 + $0x138] sm:$0xff] }
  0x7c   :  { %1056 = vmatpush3.bf16.msra.mxu1 %v1053_v46  ;;  %1026 = vmatprep.subr.bf16.mxu0 %v1025_v53  ;;  %v1083_v46 = vpack.c.bf16 %v528_v44, %v527_v43  ;;  %v529_v53 = vld [vmem:[#allocation8 + $0x30] sm:$0xff]  ;;  %v1117_v55 = vpack.c.bf16 %v562_v52, %v561_v49 }
  0x7d   :  { %1058 = vmatprep.subr.bf16.mxu1 %v1057_v56 }
  0x7f   :  { %1028 = vmatpush1.bf16.msra.mxu0 %v1027_v61  ;;  %v564_v61 = vld [vmem:[#allocation8 + $0x148] sm:$0xff] }
  0x80   :  { %1060 = vmatpush3.bf16.msra.mxu1 %v1057_v56  ;;  %1030 = vmatprep.subr.bf16.mxu0 %v1029_v62  ;;  %v1087_v56 = vpack.c.bf16 %v530_v54, %v529_v53  ;;  %v531_v62 = vld [vmem:[#allocation8 + $0x40] sm:$0xff]  ;;  %v1121_v1 = vpack.c.bf16 %v564_v61, %v563_v59 }
  0x81   :  { %1062 = vmatprep.subr.bf16.mxu1 %v1061_v2 }
  0x83   :  { %1032 = vmatpush1.bf16.msra.mxu0 %v1031_v7  ;;  %v566_v7 = vld [vmem:[#allocation8 + $0x158] sm:$0xff] }
  0x84   :  { %1064 = vmatpush3.bf16.msra.mxu1 %v1061_v2  ;;  %1034 = vmatprep.subr.bf16.mxu0 %v1033_v8  ;;  %v1091_v2 = vpack.c.bf16 %v532_v63, %v531_v62  ;;  %v533_v8 = vld [vmem:[#allocation8 + $0x50] sm:$0xff]  ;;  %v1125_v10 = vpack.c.bf16 %v566_v7, %v565_v5 }
  0x85   :  { %1066 = vmatprep.subr.bf16.mxu1 %v1065_v11 }
  0x87   :  { %1036 = vmatpush1.bf16.msra.mxu0 %v1035_v16  ;;  %v568_v16 = vld [vmem:[#allocation8 + $0x168] sm:$0xff] }
  0x88   :  { %1068 = vmatpush3.bf16.msra.mxu1 %v1065_v11  ;;  %1038 = vmatprep.subr.bf16.mxu0 %v1037_v17  ;;  %v1095_v11 = vpack.c.bf16 %v534_v9, %v533_v8  ;;  %v535_v17 = vld [vmem:[#allocation8 + $0x60] sm:$0xff]  ;;  %v1129_v19 = vpack.c.bf16 %v568_v16, %v567_v14 }
  0x89   :  { %1070 = vmatprep.subr.bf16.mxu1 %v1069_v20 }
  0x8b   :  { %1040 = vmatpush1.bf16.msra.mxu0 %v1039_v21  ;;  %v553_v21 = vld [vmem:[#allocation8 + $0xf0] sm:$0xff] }
  0x8c   :  { %1072 = vmatpush3.bf16.msra.mxu1 %v1069_v20  ;;  %1074 = vmatprep.subr.bf16.mxu0 %v1073_v26  ;;  %v1099_v20 = vpack.c.bf16 %v536_v18, %v535_v17  ;;  %v1101_v25 = vpack.c.bf16 %v554_v22, %v553_v21  ;;  %v570_v26 = vld [vmem:[#allocation8 + $0x178] sm:$0xff] }
  0x8d   :  { %1106 = vmatprep.subr.bf16.mxu1 %v1105_v30  ;;  %v1133_v29 = vpack.c.bf16 %v570_v26, %v569_v23 }
  0x8e   :  { %388 = vmatmul.mubr.f32.vlgmr.msra.gmra.mrb[4].mxu0 %v1392_v50  ;;  %v542_v50 = vld [vmem:[#allocation8 + $0x98] sm:$0xff] }
  0x8f   :  { %908 = vmatmul.mubr.f32.vlgmr.msra.gmra.mrb[2].mxu1 %v1395_v24  ;;  %393 = vmatprep.mubr.f32.mxu0 %v1297_v0  ;;  %v1077_v34 = vpack.c.bf16 %v542_v50, %v541_v32  ;;  %v558_v0 = vld [vmem:[#allocation8 + $0x118] sm:$0xff] }
  0x90   :  { %1076 = vmatpush3.bf16.msra.mxu0 %v1075_v31  ;;  %1108 = vmatpush3.bf16.msra.mxu1 %v1105_v30  ;;  %v1109_v36 = vpack.c.bf16 %v558_v0, %v557_v33  ;;  %v1103_v30 = vpack.c.bf16 %v538_v28, %v537_v27 }
  0x91   :  { %1078 = vmatprep.subr.bf16.mxu0 %v1077_v34 }
  0x92   :  { %394 = vmatmul.mubr.f32.gmra.mrb[6].mxu0 %v1395_v24  ;;  %v526_v24 = vld [vmem:[#allocation8 + $0x18] sm:$0xff]  ;;  %1110 = vmatprep.subr.bf16.mxu1 %v1109_v36 }
  0x93   :  { %v1079_v37 = vpack.c.bf16 %v526_v24, %v525_v35 }
  0x94   :  { %1112 = vmatpush3.bf16.msra.mxu1 %v1109_v36 }
  0x95   :  { %1080 = vmatpush3.bf16.msra.mxu0 %v1079_v37  ;;  %1114 = vmatprep.subr.bf16.mxu1 %v1113_v45 }
  0x96   :  { %1082 = vmatprep.subr.bf16.mxu0 %v1081_v41 }
  0x98   :  { %1116 = vmatpush3.bf16.msra.mxu1 %v1113_v45 }
  0x99   :  { %1084 = vmatpush3.bf16.msra.mxu0 %v1083_v46  ;;  %1118 = vmatprep.subr.bf16.mxu1 %v1117_v55 }
  0x9a   :  { %1086 = vmatprep.subr.bf16.mxu0 %v1085_v51 }
  0x9c   :  { %1120 = vmatpush3.bf16.msra.mxu1 %v1117_v55 }
  0x9d   :  { %1088 = vmatpush3.bf16.msra.mxu0 %v1087_v56  ;;  %1122 = vmatprep.subr.bf16.mxu1 %v1121_v1 }
  0x9e   :  { %1090 = vmatprep.subr.bf16.mxu0 %v1089_v60 }
  0xa0   :  { %1124 = vmatpush3.bf16.msra.mxu1 %v1121_v1 }
  0xa1   :  { %1092 = vmatpush3.bf16.msra.mxu0 %v1091_v2  ;;  %1126 = vmatprep.subr.bf16.mxu1 %v1125_v10 }
  0xa2   :  { %1094 = vmatprep.subr.bf16.mxu0 %v1093_v6 }
  0xa4   :  { %1128 = vmatpush3.bf16.msra.mxu1 %v1125_v10 }
  0xa5   :  { %1096 = vmatpush3.bf16.msra.mxu0 %v1095_v11  ;;  %1130 = vmatprep.subr.bf16.mxu1 %v1129_v19 }
  0xa6   :  { %1098 = vmatprep.subr.bf16.mxu0 %v1097_v15 }
  0xa8   :  { %1132 = vmatpush3.bf16.msra.mxu1 %v1129_v19 }
  0xa9   :  { %1100 = vmatpush3.bf16.msra.mxu0 %v1099_v20  ;;  %1134 = vmatprep.subr.bf16.mxu1 %v1133_v29 }
  0xaa   :  { %1102 = vmatprep.subr.bf16.mxu0 %v1101_v25 }
  0xac   :  { %1136 = vmatpush3.bf16.msra.mxu1 %v1133_v29 }
  0xad   :  { %1104 = vmatpush3.bf16.msra.mxu0 %v1103_v30 }
 0x141   :  { %v189_v31 = vpop.f32.mrb[0].mxu0  ;;  %v874_v50 = vpop.f32.mrb[0].mxu1 }
 0x142   :  { %v742_v32 = vmul.f32 -1.442695, %v189_v31  ;;  %v191_v33 = vpop.f32.mrb[1].mxu0  ;;  %v747_v34 = vmul.f32 -1.442695, %v874_v50  ;;  %v266_v35 = vpop.f32.mrb[1].mxu1 }
 0x143   :  { %v743_v0 = vmul.f32 -1.442695, %v191_v33  ;;  %v744_v24 = vmul.f32 -1.442695, %v266_v35 }
 0x144   :  { %1147 = vpow2.f32 %v742_v32 }
 0x145   :  { %1149 = vpow2.f32 %v747_v34  ;;  %v195_v36 = vpop.f32.mrb[2].mxu0 }
 0x146   :  { %1151 = vpow2.f32 %v743_v0  ;;  %v745_v37 = vmul.f32 -1.442695, %v195_v36  ;;  %v197_v38 = vpop.f32.mrb[3].mxu0 }
 0x147   :  { %1153 = vpow2.f32 %v744_v24  ;;  %v746_v39 = vmul.f32 -1.442695, %v197_v38 }
 0x148   :  { %1155 = vpow2.f32 %v745_v37 }
 0x149   :  { %1157 = vpow2.f32 %v746_v39 }
 0x14e   :  { %v1148_v40 = vpop.eup %1147 }
 0x14f   :  { %v1150_v41 = vpop.eup %1149  ;;  %v493_v42 = vadd.f32 1.0, %v1148_v40 }
 0x150   :  { %v1152_v43 = vpop.eup %1151  ;;  %v498_v44 = vadd.f32 1.0, %v1150_v41 }
 0x151   :  { %v1154_v45 = vpop.eup %1153  ;;  %v494_v46 = vadd.f32 1.0, %v1152_v43  ;;  %1159 = vrcp.f32 %v493_v42 }
 0x152   :  { %v1156_v47 = vpop.eup %1155  ;;  %v495_v48 = vadd.f32 1.0, %v1154_v45  ;;  %1161 = vrcp.f32 %v498_v44 }
 0x153   :  { %v1158_v49 = vpop.eup %1157  ;;  %v496_v51 = vadd.f32 1.0, %v1156_v47  ;;  %1163 = vrcp.f32 %v494_v46 }
 0x154   :  { %v497_v52 = vadd.f32 1.0, %v1158_v49  ;;  %1165 = vrcp.f32 %v495_v48 }
 0x155   :  { %1167 = vrcp.f32 %v496_v51 }
 0x156   :  { %1169 = vrcp.f32 %v497_v52 }
 0x15b   :  { %v1160_v53 = vpop.eup %1159 }
 0x15c   :  { %v1162_v54 = vpop.eup %1161  ;;  %v511_v57 = vmul.f32 %v1160_v53, %v189_v31 }
 0x15d   :  { %v1164_v55 = vpop.eup %1163  ;;  %v516_v59 = vmul.f32 %v1162_v54, %v874_v50 }
 0x15e   :  { %v1166_v56 = vpop.eup %1165  ;;  %v512_v60 = vmul.f32 %v1164_v55, %v191_v33 }
 0x15f   :  { %v1168_v58 = vpop.eup %1167  ;;  %v513_v63 = vmul.f32 %v1166_v56, %v266_v35 }
 0x160   :  { %v1170_v62 = vpop.eup %1169  ;;  %v514_v7 = vmul.f32 %v1168_v58, %v195_v36 }
 0x161   :  { %v389_v61 = vpop.f32.mrb[4].mxu0  ;;  %v515_v9 = vmul.f32 %v1170_v62, %v197_v38 }
 0x162   :  { %v517_v1 = vmul.f32 %v511_v57, %v389_v61  ;;  %v909_v2 = vpop.f32.mrb[2].mxu1  ;;  %v391_v3 = vpop.f32.mrb[5].mxu0 }
 0x163   :  { %v522_v4 = vmul.f32 %v909_v2, %v516_v59  ;;  %v518_v5 = vmul.f32 %v512_v60, %v391_v3  ;;  %v466_v6 = vpop.f32.mrb[3].mxu1 }
 0x164   :  { %v519_v8 = vmul.f32 %v513_v63, %v466_v6 }
 0x165   :  { %v395_v10 = vpop.f32.mrb[6].mxu0  ;;  %635 = vmatprep.mubr.f32.mxu0 %v518_v5 }
 0x166   :  { %v520_v11 = vmul.f32 %v514_v7, %v395_v10  ;;  %942 = vmatprep.mubr.f32.mxu1 %v519_v8  ;;  %v397_v12 = vpop.f32.mrb[7].mxu0  ;;  %636 = vmatmul.mubr.f32.vlgmr.msra.gmra.mrb[8].mxu0 %v517_v1 }
 0x167   :  { %v521_v13 = vmul.f32 %v515_v9, %v397_v12  ;;  %943 = vmatmul.mubr.f32.vlgmr.msra.gmra.mrb[4].mxu1 %v522_v4 }
 0x169   :  { %640 = vmatprep.mubr.f32.mxu0 %v521_v13 }
 0x16a   :  { %641 = vmatmul.mubr.f32.gmra.mrb[10].mxu0 %v520_v11 }
 0x239   :  { %v816_v14 = vpop.f32.mrb[8].mxu0 }
 0x23a   :  { %v944_v15 = vpop.f32.mrb[4].mxu1  ;;  %v817_v16 = vpop.f32.mrb[9].mxu0 }
 0x23b   :  { %v818_v17 = vadd.f32 %v817_v16, %v816_v14  ;;  %v712_v18 = vpop.f32.mrb[5].mxu1 }
 0x23d   :  { %v713_v19 = vadd.f32 %v818_v17, %v712_v18  ;;  %v819_v20 = vpop.f32.mrb[10].mxu0 }
 0x23e   :  { %v820_v21 = vpop.f32.mrb[11].mxu0 }
 0x23f   :  { %721 = vst [vmem:[#allocation10] sm:$0xff] %v713_v19  ;;  %v821_v22 = vadd.f32 %v820_v21, %v819_v20 }
 0x241   :  { %v718_v23 = vadd.f32 %v944_v15, %v821_v22 }
 0x243   :  { %722 = vst [vmem:[#allocation10 + $0x8] sm:$0xff] %v718_v23 }
 0x244   :  { %1270 = shalt.err (!%p1267_p8)
}
 0x245   :  { %s1271_s17 = scalar_lea.hbm %s1426_s4, 256 }
 0x246   :  { %p1272_p9 = scmp.ne.s32.totalorder %s1426_s4, %s1271_s17  ;;  %p1275_p10 = scmp.lt.u32.totalorder %s1271_s17, %s1426_s4 }
 0x248   :  { %p1277_p11 = pnand %p1275_p10, %p1272_p9 }
 0x24a   :  { %1280 = shalt.err (!%p1277_p11)
}
 0x24b   :  { %734 = dma.vmem_to_hbm [thread:$0]  %s729_s26, 256, %s1426_s4, [#allocation4], %s1293_s1, %s1293_s1, %s1294_s13  }
 0x24c   :  { %1287 = dma.done.wait [#allocation4], 256  }
 0x24d   :  { %1288 = vsyncadd [#allocation4], 4294967040 }
 0x24e   :  { %738 = vsyncpa [#allocation3], 1 }
 0x24f   :  { %739 = vsyncpa [#allocation6], 1 }
 0x250   :  { %740 = vsyncpa [#allocation9], 1 }
 0x251   :  { %741 = vsyncpa [#allocation4], 1 }

</bundles_post_ra>
